<compile_context>
chip_gen: v6e
topology: v6e:2x2x1
jax: 0.10.0
libtpu: 0.0.40
codegen_flags: <defaults>
</compile_context>

<pallas_src>
import numpy as np
import jax
import jax.numpy as jnp
from jax import lax
from jax.experimental import pallas as pl
from jax.experimental.pallas import tpu as pltpu

_LANES = 128
# 4096 x 128 f32 pred tile = 2 MiB; pred 2x + gt 2x + merged scratch stays
# ~10 MiB (f32 preds) / ~8 MiB (bf16 preds): inside the scoped-VMEM budget on
# v5e (16 MiB default), v6e (32 MiB) and v7x (32 MiB scoped / 64 MiB physical).
_TM_MAX = 4096


def _round_up(x, m):
    return ((x + m - 1) // m) * m


def _make_focal_kernel(tm, total_rows, num_tiles):
    """Build the focal-loss kernel with static tile geometry baked in."""
    has_partial = (total_rows % tm) != 0   # only the last M-tile can be ragged

    def kernel(pred_ref, gt_ref, loss_ref, npos_ref, a_scr):
        # grid = (num_m_tiles [parallel], S [arbitrary reduction]).
        mi = pl.program_id(0)
        s = pl.program_id(1)

        # gt-derived terms are invariant across the S stacks: compute once per
        # M-tile at s == 0, merged into ONE scratch array:
        #   gt == 1 (positive):   a = -1
        #   gt <  1 (negative):   a = (1 - gt)^2
        #   otherwise (pad rows): a = 0      -> contributes exactly 0
        @pl.when(s == 0)
        def _():
            gt = gt_ref[...]
            om = 1.0 - gt
            a = jnp.where(gt == 1.0, -1.0, jnp.where(gt < 1.0, om * om, 0.0))
            if has_partial:
                row = mi * tm + lax.broadcasted_iota(jnp.int32, (tm, _LANES), 0)
                a = jnp.where(row < total_rows, a, 0.0)
            a_scr[...] = a
            posf = (a < 0.0).astype(jnp.float32)
            # Pure-VPU partial reduce to a lane-dense (8, 128) vreg.
            npos_ref[...] = jnp.sum(posf.reshape(tm // 8, 8, _LANES), axis=0)
            loss_ref[...] = jnp.zeros_like(loss_ref)

        # bf16 preds are loaded as bf16 (half the HBM/DMA bytes) and widened
        # here; f32 preds pass through unchanged.
        pred = jnp.clip(pred_ref[...].astype(jnp.float32), 0.0001, 1.0 - 0.0001)
        om_p = 1.0 - pred
        a = a_scr[...]
        is_pos = a < 0.0

        # pos (gt==1) and neg (gt<1) paths are disjoint -> one log per element:
        #   pos: log(pred)   * (1-pred)^2
        #   neg: log(1-pred) * (pred*(1-gt)^2)^2 = log(1-pred)*pred^2*(1-gt)^4
        p_sel = jnp.where(is_pos, pred, om_p)
        t = jnp.where(is_pos, om_p, pred * a)
        elem = jnp.log(p_sel) * (t * t)

        if has_partial:
            is_last = mi == num_tiles - 1

            @pl.when(is_last)
            def _():
                # Mask AFTER computing elem: the unspecified pred bytes in the
                # ragged tail could be NaN, and 0 * NaN would poison the sum.
                row = mi * tm + lax.broadcasted_iota(jnp.int32, (tm, _LANES), 0)
                e = jnp.where(row < total_rows, elem, 0.0)
                loss_ref[...] += jnp.sum(e.reshape(tm // 8, 8, _LANES), axis=0)

            @pl.when(mi != num_tiles - 1)
            def _():
                loss_ref[...] += jnp.sum(elem.reshape(tm // 8, 8, _LANES), axis=0)
        else:
            loss_ref[...] += jnp.sum(elem.reshape(tm // 8, 8, _LANES), axis=0)

    return kernel


def focal_loss(preds, gts):
    """preds: (S, B, C, H, W), gts: (B, C, H, W) -> scalar float32 loss."""
    S = preds.shape[0]
    assert preds.shape[1:] == gts.shape
    total = int(np.prod(gts.shape))

    # Keep bf16 preds in bf16: the pred stack is the dominant HBM stream, so
    # not upcasting in the wrapper halves its bytes (the kernel widens to f32
    # right after the tile load).  Everything else runs in f32.
    if preds.dtype not in (jnp.bfloat16, jnp.float32):
        preds = preds.astype(jnp.float32)
    p = preds.reshape(S, total)
    g = gts.astype(jnp.float32).reshape(total)

    # The big pad-to-M-tile copy of the full pred stack is gone: the ragged
    # last M-tile is masked in-kernel.  Only two cheap edge cases still pad:
    #   * total % 128 != 0  -> pad < 128 elems so the lane-dense reshape works
    #   * fewer than 8 rows -> pad up to the minimum (8, 128) tile
    # gt pad = 2.0 => pos = neg = 0, so padded elements contribute exactly 0.
    rem = total % _LANES
    if rem:
        pad = _LANES - rem
        p = jnp.concatenate([p, jnp.full((S, pad), 0.5, p.dtype)], axis=1)
        g = jnp.concatenate([g, jnp.full((pad,), 2.0, jnp.float32)])
    m_rows = p.shape[1] // _LANES
    p = p.reshape(S, m_rows, _LANES)
    g = g.reshape(m_rows, _LANES)
    if m_rows < 8:
        pad_r = 8 - m_rows
        p = jnp.concatenate(
            [p, jnp.full((S, pad_r, _LANES), 0.5, p.dtype)], axis=1)
        g = jnp.concatenate(
            [g, jnp.full((pad_r, _LANES), 2.0, jnp.float32)], axis=0)
        m_rows = 8

    # M-tile: as large as the VMEM budget allows, but always split into >= 2
    # "parallel" M-tiles when possible so both v7x TensorCores get work.
    if m_rows <= 8:
        tm = 8
    else:
        tm = min(_TM_MAX, _round_up(-(-m_rows // 2), 8))
    num_tiles = -(-m_rows // tm)

    kernel = _make_focal_kernel(tm, m_rows, num_tiles)
    loss_part, npos_part = pl.pallas_call(
        kernel,
        out_shape=(
            jax.ShapeDtypeStruct((num_tiles, 8, _LANES), jnp.float32),
            jax.ShapeDtypeStruct((num_tiles, 8, _LANES), jnp.float32),
        ),
        grid_spec=pltpu.PrefetchScalarGridSpec(
            num_scalar_prefetch=0,
            grid=(num_tiles, S),
            in_specs=[
                # pred: squeeze the stack dim; kernel sees a 2-D (tm, 128) tile.
                pl.BlockSpec((None, tm, _LANES), lambda mi, si: (si, mi, 0)),
                # gt: same block index for every s -> stays VMEM-resident.
                pl.BlockSpec((tm, _LANES), lambda mi, si: (mi, 0)),
            ],
            out_specs=[
                pl.BlockSpec((None, 8, _LANES), lambda mi, si: (mi, 0, 0)),
                pl.BlockSpec((None, 8, _LANES), lambda mi, si: (mi, 0, 0)),
            ],
            scratch_shapes=[
                # merged gt cache: -1 for positives, (1-gt)^2 for negatives.
                pltpu.VMEM((tm, _LANES), jnp.float32),
            ],
        ),
        compiler_params=pltpu.CompilerParams(
            dimension_semantics=("parallel", "arbitrary"),
            vmem_limit_bytes=32 * 1024 * 1024),
    )(p, g)

    num_pos = jnp.sum(npos_part)
    total_sum = jnp.sum(loss_part)
    # The num_pos == 0 branch of the reference is redundant: pos_loss == 0 then,
    # so -(pos+neg)/max(num_pos,1) reduces to -neg_loss exactly.
    return -total_sum / jnp.maximum(num_pos, 1.0) / jnp.float32(S)


def _focal_loss_ref(preds, gts):
    """Pure-JAX reference mirroring the PyTorch _neg_loss exactly."""
    pos_inds = (gts == 1.0).astype(jnp.float32)
    neg_inds = (gts < 1.0).astype(jnp.float32)
    neg_weights = (1.0 - gts) ** 4
    loss = 0.0
    for pred in preds:
        pred = jnp.clip(pred, 0.0001, 1.0 - 0.0001)
        pos_loss = jnp.sum(jnp.log(pred) * (1.0 - pred) ** 2 * pos_inds)
        neg_loss = jnp.sum(jnp.log(1.0 - pred) * pred ** 2 * neg_weights * neg_inds)
        num_pos = jnp.sum(pos_inds)
        loss = loss + jnp.where(num_pos == 0.0,
                                -neg_loss,
                                -(pos_loss + neg_loss) / jnp.maximum(num_pos, 1.0))
    return loss / preds.shape[0]


if __name__ == "__main__":
    key = jax.random.PRNGKey(0)

    def make_inputs(k, S, B, C, H, W, n_peaks=8):
        kp, kt, ki = jax.random.split(k, 3)
        preds = jax.random.uniform(kp, (S, B, C, H, W), dtype=jnp.float32,
                                   minval=0.0, maxval=1.0)
        # Gaussian-ish target in [0, 1) with a few exact 1.0 peaks (positives).
        target = jax.random.uniform(kt, (B, C, H, W), dtype=jnp.float32,
                                    minval=0.0, maxval=0.98)
        flat = target.reshape(-1)
        peak_idx = jax.random.choice(ki, flat.shape[0], shape=(n_peaks,),
                                     replace=False)
        target = flat.at[peak_idx].set(1.0).reshape(B, C, H, W)
        return preds, target

    k1, k2, k3 = jax.random.split(key, 3)

    # 1) f32 preds, lane-aligned heatmap (2 full M-tiles -> both v7x cores).
    preds, target = make_inputs(k1, 2, 2, 4, 16, 16)
    loss = jax.block_until_ready(focal_loss(preds, target))
    ref = jax.block_until_ready(_focal_loss_ref(preds, target))
    np.testing.assert_allclose(np.asarray(loss), np.asarray(ref),
                               rtol=1e-4, atol=1e-5)

    # 2) ragged shape: exercises the lane pad + in-kernel partial-tile masking.
    preds2, target2 = make_inputs(k2, 2, 2, 3, 13, 16)
    loss2 = jax.block_until_ready(focal_loss(preds2, target2))
    ref2 = jax.block_until_ready(_focal_loss_ref(preds2, target2))
    np.testing.assert_allclose(np.asarray(loss2), np.asarray(ref2),
                               rtol=1e-4, atol=1e-5)

    # 3) bf16 preds consumed directly (no wrapper upcast of the pred stack).
    preds3, target3 = make_inputs(k3, 2, 2, 4, 16, 16)
    preds3_bf16 = preds3.astype(jnp.bfloat16)
    loss3 = jax.block_until_ready(focal_loss(preds3_bf16, target3))
    ref3 = jax.block_until_ready(
        _focal_loss_ref(preds3_bf16.astype(jnp.float32), target3))
    np.testing.assert_allclose(np.asarray(loss3), np.asarray(ref3),
                               rtol=1e-4, atol=1e-5)

    print("KERNEL_OK")
</pallas_src>

<mosaic_0001>
module attributes {stable_mosaic.version = 11 : i64} {
  func.func @kernel(%arg0: i32, %arg1: i32, %arg2: memref<1x8x128xf32, #tpu.memory_space<vmem>>, %arg3: memref<8x128xf32, #tpu.memory_space<vmem>>, %arg4: memref<1x8x128xf32, #tpu.memory_space<vmem>>, %arg5: memref<1x8x128xf32, #tpu.memory_space<vmem>>, %arg6: memref<8x128xf32, #tpu.memory_space<vmem>>) attributes {dimension_semantics = [#tpu.dimension_semantics<parallel>, #tpu.dimension_semantics<arbitrary>], iteration_bounds = array<i64: 2, 2>, scalar_prefetch = 0 : i64, scratch_operands = 1 : i64, tpu.core_type = #tpu.core_type<tc>, window_params = [{transform_indices = @transform_0, window_bounds = array<i64: 1, 8, 128>}, {transform_indices = @transform_1, window_bounds = array<i64: 8, 128>}, {transform_indices = @transform_2, window_bounds = array<i64: 1, 8, 128>}, {transform_indices = @transform_3, window_bounds = array<i64: 1, 8, 128>}]} {
    %c0_i32 = arith.constant 0 : i32
    %0 = arith.cmpi eq, %arg1, %c0_i32 : i32
    %1 = arith.extui %0 : i1 to i32
    %c0_i32_0 = arith.constant 0 : i32
    %2 = arith.cmpi ne, %1, %c0_i32_0 : i32
    scf.if %2 {
      %c0_15 = arith.constant 0 : index
      %c0_16 = arith.constant 0 : index
      %28 = vector.load %arg3[%c0_15, %c0_16] : memref<8x128xf32, #tpu.memory_space<vmem>>, vector<8x128xf32>
      %cst_17 = arith.constant 1.000000e+00 : f32
      %29 = vector.broadcast %cst_17 : f32 to vector<8x128xf32>
      %30 = arith.subf %29, %28 : vector<8x128xf32>
      %cst_18 = arith.constant 1.000000e+00 : f32
      %31 = vector.broadcast %cst_18 : f32 to vector<8x128xf32>
      %32 = arith.cmpf oeq, %28, %31 : vector<8x128xf32>
      %cst_19 = arith.constant 1.000000e+00 : f32
      %33 = vector.broadcast %cst_19 : f32 to vector<8x128xf32>
      %34 = arith.cmpf olt, %28, %33 : vector<8x128xf32>
      %35 = arith.mulf %30, %30 : vector<8x128xf32>
      %cst_20 = arith.constant 0.000000e+00 : f32
      %36 = vector.broadcast %cst_20 : f32 to vector<8x128xf32>
      %37 = arith.select %34, %35, %36 : vector<8x128xi1>, vector<8x128xf32>
      %cst_21 = arith.constant -1.000000e+00 : f32
      %38 = vector.broadcast %cst_21 : f32 to vector<8x128xf32>
      %39 = arith.select %32, %38, %37 : vector<8x128xi1>, vector<8x128xf32>
      %c0_22 = arith.constant 0 : index
      %c0_23 = arith.constant 0 : index
      %40 = vector.load %arg6[%c0_22, %c0_23] : memref<8x128xf32, #tpu.memory_space<vmem>>, vector<8x128xf32>
      tpu.vector_store %arg6[%c0_22, %c0_23], %39 {strides = array<i32>} : memref<8x128xf32, #tpu.memory_space<vmem>>, vector<8x128xf32>,
      %cst_24 = arith.constant 0.000000e+00 : f32
      %41 = vector.broadcast %cst_24 : f32 to vector<8x128xf32>
      %42 = arith.cmpf olt, %39, %41 : vector<8x128xf32>
      %43 = arith.extui %42 : vector<8x128xi1> to vector<8x128xi32>
      %44 = arith.sitofp %43 : vector<8x128xi32> to vector<8x128xf32>
      %45 = vector.shape_cast %44 : vector<8x128xf32> to vector<1x8x128xf32>
      %cst_25 = arith.constant dense<0.000000e+00> : vector<8x128xf32>
      %46 = vector.multi_reduction <add>, %45, %cst_25 [0] : vector<1x8x128xf32> to vector<8x128xf32>
      %c0_26 = arith.constant 0 : index
      %c0_27 = arith.constant 0 : index
      %c0_28 = arith.constant 0 : index
      %47 = vector.load %arg5[%c0_26, %c0_27, %c0_28] : memref<1x8x128xf32, #tpu.memory_space<vmem>>, vector<1x8x128xf32>
      %48 = vector.shape_cast %47 : vector<1x8x128xf32> to vector<8x128xf32>
      %49 = vector.shape_cast %46 : vector<8x128xf32> to vector<1x8x128xf32>
      tpu.vector_store %arg5[%c0_26, %c0_27, %c0_28], %49 {strides = array<i32>} : memref<1x8x128xf32, #tpu.memory_space<vmem>>, vector<1x8x128xf32>,
      %cst_29 = arith.constant 0.000000e+00 : f32
      %50 = vector.broadcast %cst_29 : f32 to vector<8x128xf32>
      %c0_30 = arith.constant 0 : index
      %c0_31 = arith.constant 0 : index
      %c0_32 = arith.constant 0 : index
      %51 = vector.load %arg4[%c0_30, %c0_31, %c0_32] : memref<1x8x128xf32, #tpu.memory_space<vmem>>, vector<1x8x128xf32>
      %52 = vector.shape_cast %51 : vector<1x8x128xf32> to vector<8x128xf32>
      %53 = vector.shape_cast %50 : vector<8x128xf32> to vector<1x8x128xf32>
      tpu.vector_store %arg4[%c0_30, %c0_31, %c0_32], %53 {strides = array<i32>} : memref<1x8x128xf32, #tpu.memory_space<vmem>>, vector<1x8x128xf32>,
    } else {
    }
    %c0 = arith.constant 0 : index
    %c0_1 = arith.constant 0 : index
    %c0_2 = arith.constant 0 : index
    %3 = vector.load %arg2[%c0, %c0_1, %c0_2] : memref<1x8x128xf32, #tpu.memory_space<vmem>>, vector<1x8x128xf32>
    %4 = vector.shape_cast %3 : vector<1x8x128xf32> to vector<8x128xf32>
    %cst = arith.constant 9.99999974E-5 : f32
    %cst_3 = arith.constant 0.999899983 : f32
    %5 = vector.broadcast %cst : f32 to vector<8x128xf32>
    %6 = arith.maximumf %5, %4 : vector<8x128xf32>
    %7 = vector.broadcast %cst_3 : f32 to vector<8x128xf32>
    %8 = arith.minimumf %7, %6 : vector<8x128xf32>
    %cst_4 = arith.constant 1.000000e+00 : f32
    %9 = vector.broadcast %cst_4 : f32 to vector<8x128xf32>
    %10 = arith.subf %9, %8 : vector<8x128xf32>
    %c0_5 = arith.constant 0 : index
    %c0_6 = arith.constant 0 : index
    %11 = vector.load %arg6[%c0_5, %c0_6] : memref<8x128xf32, #tpu.memory_space<vmem>>, vector<8x128xf32>
    %cst_7 = arith.constant 0.000000e+00 : f32
    %12 = vector.broadcast %cst_7 : f32 to vector<8x128xf32>
    %13 = arith.cmpf olt, %11, %12 : vector<8x128xf32>
    %14 = arith.select %13, %8, %10 : vector<8x128xi1>, vector<8x128xf32>
    %15 = arith.mulf %8, %11 : vector<8x128xf32>
    %16 = arith.select %13, %10, %15 : vector<8x128xi1>, vector<8x128xf32>
    %17 = math.log %14 : vector<8x128xf32>
    %18 = arith.mulf %16, %16 : vector<8x128xf32>
    %19 = arith.mulf %17, %18 : vector<8x128xf32>
    %c0_8 = arith.constant 0 : index
    %c0_9 = arith.constant 0 : index
    %c0_10 = arith.constant 0 : index
    %20 = vector.load %arg4[%c0_8, %c0_9, %c0_10] : memref<1x8x128xf32, #tpu.memory_space<vmem>>, vector<1x8x128xf32>
    %21 = vector.shape_cast %20 : vector<1x8x128xf32> to vector<8x128xf32>
    %22 = vector.shape_cast %19 : vector<8x128xf32> to vector<1x8x128xf32>
    %cst_11 = arith.constant dense<0.000000e+00> : vector<8x128xf32>
    %23 = vector.multi_reduction <add>, %22, %cst_11 [0] : vector<1x8x128xf32> to vector<8x128xf32>
    %24 = arith.addf %21, %23 : vector<8x128xf32>
    %c0_12 = arith.constant 0 : index
    %c0_13 = arith.constant 0 : index
    %c0_14 = arith.constant 0 : index
    %25 = vector.load %arg4[%c0_12, %c0_13, %c0_14] : memref<1x8x128xf32, #tpu.memory_space<vmem>>, vector<1x8x128xf32>
    %26 = vector.shape_cast %25 : vector<1x8x128xf32> to vector<8x128xf32>
    %27 = vector.shape_cast %24 : vector<8x128xf32> to vector<1x8x128xf32>
    tpu.vector_store %arg4[%c0_12, %c0_13, %c0_14], %27 {strides = array<i32>} : memref<1x8x128xf32, #tpu.memory_space<vmem>>, vector<1x8x128xf32>,
    return
  }
  func.func @transform_0(%arg0: i32, %arg1: i32) -> (i32, i32, i32) {
    %c0_i32 = arith.constant 0 : i32
    %c0_i32_0 = arith.constant 0 : i32
    return %arg1, %arg0, %c0_i32 : i32, i32, i32
  }
  func.func @transform_1(%arg0: i32, %arg1: i32) -> (i32, i32) {
    %c0_i32 = arith.constant 0 : i32
    %c0_i32_0 = arith.constant 0 : i32
    return %arg0, %c0_i32 : i32, i32
  }
  func.func @transform_2(%arg0: i32, %arg1: i32) -> (i32, i32, i32) {
    %c0_i32 = arith.constant 0 : i32
    %c0_i32_0 = arith.constant 0 : i32
    %c0_i32_1 = arith.constant 0 : i32
    return %arg0, %c0_i32, %c0_i32_0 : i32, i32, i32
  }
  func.func @transform_3(%arg0: i32, %arg1: i32) -> (i32, i32, i32) {
    %c0_i32 = arith.constant 0 : i32
    %c0_i32_0 = arith.constant 0 : i32
    %c0_i32_1 = arith.constant 0 : i32
    return %arg0, %c0_i32, %c0_i32_0 : i32, i32, i32
  }
}

</mosaic_0001>

<bundles_post_ra>
// kernel: tpu_custom_call.1
= control target key start
LH: loop header
LB: loop body
LE: loop exit
PB: predicated region body
PF: predicated region fallthrough
CT: control target
= control target key end

     0   :  { %s1110_s0 = inlined_call_operand.hbm [shape: f32[2,16,128], index: 0, kind: input, shape index: {}]   ;;  %s1111_s1 = inlined_call_operand.hbm [shape: f32[16,128], index: 1, kind: input, shape index: {}]   ;;  %s1112_s2 = inlined_call_operand.hbm [shape: f32[2,8,128], index: 2, kind: output, shape index: {0}]   ;;  %s1113_s3 = inlined_call_operand.hbm [shape: f32[2,8,128], index: 3, kind: output, shape index: {1}]  }
   0x1   :  { %1121 = sst [smem:[#allocation18_spill]] %s1110_s0 }
   0x2   :  { %1122 = sst [smem:[#allocation19_spill]] %s1112_s2 }
   0x3   :  { %9 = vsyncpa [#allocation4], 0 }
   0x4   :  { %11 = vsyncpa [#allocation4 + $0x1], 0 }
   0x5   :  { %12 = vsyncpa [#allocation7], 0 }
   0x6   :  { %14 = vsyncpa [#allocation7 + $0x1], 0 }
   0x7   :  { %15 = vsyncpa [#allocation5], 0 }
   0x8   :  { %17 = vsyncpa [#allocation5 + $0x1], 0 }
   0x9   :  { %18 = vsyncpa [#allocation10], 0 }
   0xa   :  { %20 = vsyncpa [#allocation10 + $0x1], 0  ;;  %s829_s12 = smov 0   ;;  %s831_s13 = smov 0  }
   0xb   :  { %s833_s14 = smov 0   ;;  %s835_s15 = smov 0  }
   0xc   :  { %s837_s16 = smov 0   ;;  %s839_s17 = smov 0  }
   0xd   :  { %s841_s18 = smov 0   ;;  %s843_s19 = smov 0  }
   0xe   :  { %s845_s20 = smov 0   ;;  %s847_s21 = smov 0  }
   0xf   :  { %s849_s22 = smov 0  }
  0x10 LB: > { %1123 = sst [smem:[#allocation15_spill]] %s798_s21  ;;  %s1114_s23 = sadd.s32 4294967295, %s802_s22   ;;  %s802_s22 = sphi %s849_s22, %s26_s22   ;;  %s798_s21 = sphi %s847_s21, %s1143_s21   ;;  %s794_s20 = sphi %s845_s20, %s1151_s20   ;;  %s790_s19 = sphi %s843_s19, %s1141_s19   ;;  %s786_s18 = sphi %s841_s18, %s1150_s18   ;;  %s782_s17 = sphi %s839_s17, %s1149_s17   ;;  %s778_s16 = sphi %s837_s16, %s1148_s16   ;;  %s774_s15 = sphi %s835_s15, %s1147_s15   ;;  %s770_s14 = sphi %s833_s14, %s1146_s14   ;;  %s766_s13 = sphi %s831_s13, %s1145_s13   ;;  %s762_s12 = sphi %s829_s12, %s1144_s12  }
  0x11   : > { %s35_s24 = sadd.s32 1, %s794_s20  ;;  %s38_s25 = sadd.s32 1, %s798_s21 }
  0x12   : > { %p36_p0 = scmp.ge.s32.totalorder %s35_s24, 2  ;;  %s47_s26 = sadd.s32 1, %s782_s17 }
  0x13   : > { %p54_p1 = scmp.ne.s32.totalorder %s782_s17, %s778_s16  ;;  %p1118_p2 = scmp.eq.s32.totalorder %s802_s22, 0 }
  0x14   : > { %s1153_s24 = smov (%p36_p0, %s35_s24), 0  ;;  %s1155_s25 = smov (!%p36_p0, %s38_s25), %s798_s21 }
  0x15   : > { %1124 = sst [smem:[#allocation16_spill]] %s1153_s24  ;;  %s42_s27 = ssub.s32 %s794_s20, %s1153_s24 }
  0x16   : > { %p40_p3 = scmp.ge.s32.totalorder %s1155_s25, 2  ;;  %p60_p4 = scmp.ne.s32.totalorder %s778_s16, %s774_s15 }
  0x17   : > { %p897_p5 = por %p1118_p2, %p54_p1  ;;  %p903_p6 = scmp.eq.s32.totalorder %s1114_s23, 0 }
  0x18   : > { %s1157_s25 = smov (%p40_p3, %s1155_s25), 0  ;;  %p1119_p8 = scmp.lt.s32.totalorder %s802_s22, 4 }
  0x19   : > { %1127 = sst [smem:[#allocation17_spill]] %s1157_s25  ;;  %p911_p7 = por %p903_p6, %p60_p4 }
  0x1a   : > { %s917_s4 = ssub.s32 %s798_s21, %s1157_s25  ;;  %s162_s6 = sand.u32 1, %s782_s17  }
  0x1b   : > { %s44_s5 = sor.u32 %s917_s4, %s42_s27  ;;  %p71_p9 = scmp.eq.s32.totalorder %s917_s4, 0 }
  0x1c   : > { %p45_p10 = scmp.eq.s32.totalorder %s44_s5, 0  ;;  %s459_s7 = sshll.u32 %s162_s6, 3 }
  0x1d   : > { %s460_s9 = sshll.u32 %s794_s20, 1  ;;  %s166_s11 = scalar_lea.vmem [#allocation3], %s459_s7 }
  0x1e   : > { %s924_s8 = scalar_select %p45_p10, %s782_s17, %s47_s26  }
  0x1f   : > { %s171_s10 = sadd.s32 %s798_s21, %s460_s9  ;;  %s175_s15 = sshll.u32 %s166_s11, 4  ;;  %s176_s15 = int_to_ptr.vmem [resolvable:$true] %s175_s15 }
  0x20   : > { %s461_s23 = sshll.u32 %s171_s10, 7  ;;  %s1129_s0 = sld [smem:[#allocation18_spill]] }
  0x21   : > { %p935_p11 = pnand %p1119_p8, %p897_p5  ;;  %p464_p12 = scmp.ge.s32.totalorder %s802_s22, 1 }
  0x22   : > { %p198_p13 = scmp.lt.s32.totalorder %s802_s22, 5  ;;  %s163_s26 = scalar_lea.sflag [#allocation4], %s162_s6 }
  0x23   : > { %p594_p0 = pneg %p935_p11  ;;  %s605_s5 = scalar_lea.vmem %s176_s15, 128 }
  0x24   : > { %p606_p1 = scmp.ne.s32.totalorder %s176_s15, %s605_s5  ;;  %s804_s7 = smov [#allocation3]  }
  0x25   : > { %s610_s9 = sshll.u32 %s804_s7, 4  ;;  %s611_s9 = int_to_ptr.vmem [resolvable:$false] %s610_s9 }
  0x26   : > { %s173_s2 = scalar_lea.hbm %s1129_s0, %s461_s23  ;;  %p608_p3 = pnand %p606_p1, %p594_p0 }
  0x27   : > { %s612_s23 = scalar_lea.vmem %s611_s9, 256  ;;  %p613_p10 = scmp.lt.s32.totalorder %s176_s15, %s611_s9 }
  0x28   : > { %p609_p4 = pneg %p608_p3  ;;  %p614_p2 = scmp.lt.s32.totalorder %s612_s23, %s605_s5 }
  0x2a   : > { %p615_p5 = por %p614_p2, %p613_p10 }
  0x2c   : > { %p616_p8 = pnand %p615_p5, %p609_p4 }
  0x2e   : > { %619 = shalt.err (!%p616_p8)
}
  0x2f   : > { %488 = dma.hbm_to_vmem [thread:$0]  (!%p935_p11), %s173_s2, 128, %s176_s15, %s163_s26  }
  0x30   : > { %p949_p2 = pnand %p464_p12, %p198_p13  ;;  %s456_s25 = sadd.s32 4294967294, %s802_s22  }
  0x31   : > { %s73_s28 = sadd.s32 1, %s770_s14  ;;  %p80_p8 = scmp.ne.s32.totalorder %s770_s14, %s766_s13 }
  0x32   : > { %s958_s6 = scalar_select %p71_p9, %s770_s14, %s73_s28  }
  0x33   : > { %p86_p0 = scmp.ne.s32.totalorder %s766_s13, %s762_s12  ;;  %s1132_s10 = sadd.s32 4294967295, %s802_s22  }
  0x34   : > { %p110_p1 = scmp.eq.s32.totalorder %s1132_s10, 3  ;;  %p116_p3 = scmp.eq.s32.totalorder %s456_s25, 3 }
  0x35   : > { %p1133_p4 = scmp.eq.s32.totalorder %s802_s22, 0  ;;  %p970_p11 = por %p86_p0, %p903_p6 }
  0x36   : > { %p974_p12 = por %p110_p1, %p80_p8  ;;  %p978_p13 = por %p116_p3, %p86_p0 }
  0x37   : > { %p82_p10 = por %p80_p8, %p1133_p4  ;;  %s182_s15 = sand.u32 1, %s770_s14  }
  0x38   : > { %s1136_s4 = scalar_select %p978_p13, 1, 0 }
  0x39   : > { %s463_s27 = sshll.u32 %s798_s21, 7  ;;  %s462_s26 = sshll.u32 %s182_s15, 3 }
  0x3a   : > { %s191_s9 = scalar_lea.hbm %s1111_s1, %s463_s27  ;;  %s186_s29 = scalar_lea.vmem [#allocation6], %s462_s26 }
  0x3b   : > { %s193_s23 = sshll.u32 %s186_s29, 4  ;;  %p1137_p6 = scmp.lt.s32.totalorder %s802_s22, 4  ;;  %s194_s23 = int_to_ptr.vmem [resolvable:$true] %s193_s23 }
  0x3c   : > { %s183_s28 = scalar_lea.sflag [#allocation7], %s182_s15  ;;  %s633_s10 = scalar_lea.vmem %s194_s23, 128 }
  0x3d   : > { %p989_p9 = pnand %p1137_p6, %p82_p10  ;;  %p634_p8 = scmp.ne.s32.totalorder %s194_s23, %s633_s10 }
  0x3e   : > { %s805_s0 = smov [#allocation6]  }
  0x3f   : > { %p622_p5 = pneg %p989_p9  ;;  %s638_s21 = sshll.u32 %s805_s0, 4  ;;  %s639_s21 = int_to_ptr.vmem [resolvable:$false] %s638_s21 }
  0x40   : > { %s640_s27 = scalar_lea.vmem %s639_s21, 256  ;;  %p641_p3 = scmp.lt.s32.totalorder %s194_s23, %s639_s21 }
  0x41   : > { %p636_p0 = pnand %p634_p8, %p622_p5  ;;  %p642_p4 = scmp.lt.s32.totalorder %s640_s27, %s633_s10 }
  0x43   : > { %p637_p1 = pneg %p636_p0  ;;  %p643_p13 = por %p642_p4, %p641_p3 }
  0x45   : > { %p644_p10 = pnand %p643_p13, %p637_p1 }
  0x47   : > { %647 = shalt.err (!%p644_p10)
}
  0x48   : > { %491 = dma.hbm_to_vmem [thread:$0]  (!%p989_p9), %s191_s9, 128, %s194_s23, %s183_s28  }
  0x49   : > { %202 = sbr.rel (%p949_p2) target bundleno = 157 (0x9d), region = 28  ;;  %s204_s15 = sand.u32 (!%p949_p2), 1, %s778_s16  }
  0x4a   : > { %s1000_s26 = sshll.u32 (!%p949_p2), %s204_s15, 3  ;;  %s205_s0 = scalar_lea.sflag (!%p949_p2), [#allocation4], %s204_s15 }
  0x4b   : > { %s208_s5 = scalar_lea.vmem (!%p949_p2), [#allocation3], %s1000_s26 }
  0x4e   : > { %745 = dma.done.wait (%p911_p7), %s205_s0, 128  }
  0x4f   : > { %747 = vsyncadd (%p911_p7), %s205_s0, 4294967168  ;;  %s1008_s21 = sand.u32 1, %s766_s13  }
  0x50   : > { %s1011_s24 = sshll.u32 %s1008_s21, 3  ;;  %s214_s7 = scalar_lea.sflag [#allocation7], %s1008_s21 }
  0x51   : > { %s217_s9 = scalar_lea.vmem [#allocation6], %s1011_s24 }
  0x52   : > { %749 = dma.done.wait (%p970_p11), %s214_s7, 128  }
  0x53   : > { %751 = vsyncadd (%p970_p11), %s214_s7, 4294967168  ;;  %s1020_s30 = scalar_lea.vmem [#allocation8], %s1011_s24  ;;  %s249_s29 = scalar_lea.vmem [#allocation9], %s1011_s24 }
  0x54   : > { %p469_p7 = scmp.ne.s32.totalorder %s786_s18, 0 }
  0x56   : > { %253 = sbr.rel (%p469_p7) target bundleno = 101 (0x65), region = 40 }
  0x5b   : > { %v254_v0 = vld [vmem:[%s217_s9] sm:$0xff]  ;;  %v806_v2 = vmov 0.0  }
  0x5c   : > { %v255_v1 = vsub.f32 1.0, %v254_v0  ;;  %267 = vst [vmem:[%s1020_s30] sm:$0xff] %v806_v2  ;;  %vm257_vm0 = vcmp.lt.f32.partialorder %v254_v0, 1.0  ;;  %vm256_vm1 = vcmp.eq.f32.partialorder %v254_v0, 1.0 }
  0x5e   : > { %v258_v3 = vmul.f32 %v255_v1, %v255_v1 }
  0x60   : > { %v259_v4 = vsel %vm257_vm0, %v258_v3, 0.0 }
  0x61   : > { %v260_v5 = vsel %vm256_vm1, -1.0, %v259_v4 }
  0x62   : > { %261 = vst [vmem:[#allocation2] sm:$0xff] %v260_v5  ;;  %vm262_vm2 = vcmp.lt.f32.partialorder %v260_v5, 0.0 }
  0x63   : > { %v470_v6 = vsel %vm262_vm2, 1.0, %v806_v2 }
  0x64   : > { %266 = vst [vmem:[%s249_s29] sm:$0xff] %v470_v6 }
  0x65 PF: > { %v268_v7 = vld [vmem:[%s208_s5] sm:$0xff]  ;;  %s473_s18 = sshll.u32 %s790_s19, 7  ;;  %s317_s28 = sshll.u32 %s249_s29, 4  ;;  %s318_s28 = int_to_ptr.vmem [resolvable:$true] %s317_s28 }
  0x66   : > { %v269_v8 = vmax.f32 %v268_v7, 0.0001  ;;  %s1031_s25 = scalar_lea.hbm %s1113_s3, %s473_s18  ;;  %s291_s10 = scalar_lea.sflag [#allocation10], %s1008_s21 }
  0x67   : > { %s648_s27 = scalar_lea.vmem %s318_s28, 128  ;;  %s807_s15 = smov [#allocation9]  }
  0x68   : > { %v270_v10 = vmin.f32 %v269_v8, 0.9999  ;;  %p649_p2 = scmp.ne.s32.totalorder %s318_s28, %s648_s27  ;;  %s652_s26 = sshll.u32 %s807_s15, 4  ;;  %s653_s26 = int_to_ptr.vmem [resolvable:$false] %s652_s26 }
  0x69   : > { %v272_v9 = vld [vmem:[#allocation2] sm:$0xff]  ;;  %s654_s0 = scalar_lea.vmem %s653_s26, 256  ;;  %p655_p6 = scmp.lt.s32.totalorder %s318_s28, %s653_s26 }
  0x6a   : > { %vm273_vm3 = vcmp.lt.f32.partialorder %v272_v9, 0.0  ;;  %v271_v11 = vsub.f32 1.0, %v270_v10  ;;  %p650_p11 = pnand %p649_p2, %p974_p12  ;;  %p656_p9 = scmp.lt.s32.totalorder %s654_s0, %s648_s27 }
  0x6c   : > { %p651_p13 = pneg %p650_p11  ;;  %p657_p5 = por %p656_p9, %p655_p6 }
  0x6e   : > { %p658_p8 = pnand %p657_p5, %p651_p13 }
  0x70   : > { %661 = shalt.err (!%p658_p8)
}
  0x71   : > { %s662_s5 = scalar_lea.hbm %s1031_s25, 128  ;;  %s666_s9 = scalar_lea.hbm %s1113_s3, 256 }
  0x72   : > { %p663_p0 = scmp.ne.s32.totalorder %s1031_s25, %s662_s5  ;;  %p667_p4 = scmp.lt.s32.totalorder %s1031_s25, %s1113_s3 }
  0x73   : > { %p668_p10 = scmp.lt.s32.totalorder %s666_s9, %s662_s5 }
  0x74   : > { %p664_p1 = pnand %p663_p0, %p974_p12 }
  0x75   : > { %p669_p7 = por %p668_p10, %p667_p4 }
  0x76   : > { %p665_p3 = pneg %p664_p1 }
  0x78   : > { %p670_p2 = pnand %p669_p7, %p665_p3 }
  0x7a   : > { %673 = shalt.err (!%p670_p2)
}
  0x7b   : > { %482 = dma.vmem_to_hbm [thread:$0]  (%p974_p12), %s318_s28, 128, %s1031_s25, %s291_s10   ;;  %v274_v12 = vsel %vm273_vm3, %v270_v10, %v271_v11  ;;  %v275_v13 = vmul.f32 %v272_v9, %v270_v10  ;;  %v281_v18 = vld [vmem:[%s1020_s30] sm:$0xff] }
  0x7c   : > { %590 = vlog2.f32 %v274_v12  ;;  %s304_s23 = sshll.u32 %s1020_s30, 4  ;;  %s1139_s26 = sld [smem:[#allocation19_spill]]  ;;  %s305_s23 = int_to_ptr.vmem [resolvable:$true] %s304_s23 }
  0x7d   : > { %v276_v14 = vsel %vm273_vm3, %v271_v11, %v275_v13  ;;  %s286_s25 = scalar_lea.sflag [#allocation5], %s1008_s21  ;;  %s674_s28 = scalar_lea.vmem %s305_s23, 128 }
  0x7e   : > { %v279_v15 = vmul.f32 %v276_v14, %v276_v14  ;;  %p675_p11 = scmp.ne.s32.totalorder %s305_s23, %s674_s28  ;;  %s808_s10 = smov [#allocation8]  }
  0x7f   : > { %s678_s5 = sshll.u32 %s808_s10, 4  ;;  %s679_s5 = int_to_ptr.vmem [resolvable:$false] %s678_s5 }
  0x80   : > { %p676_p13 = pnand %p675_p11, %p974_p12  ;;  %s680_s24 = scalar_lea.vmem %s679_s5, 256 }
  0x81   : > { %p681_p9 = scmp.lt.s32.totalorder %s305_s23, %s679_s5  ;;  %p682_p5 = scmp.lt.s32.totalorder %s680_s24, %s674_s28 }
  0x82   : > { %s302_s0 = scalar_lea.hbm %s1139_s26, %s473_s18  ;;  %p677_p6 = pneg %p676_p13 }
  0x83   : > { %p683_p8 = por %p682_p5, %p681_p9 }
  0x85   : > { %p684_p0 = pnand %p683_p8, %p677_p6 }
  0x89   : > { %v591_v16 = vpop.eup %590 }
  0x8a   : > { %v278_v17 = vmul.f32 0.6931472, %v591_v16 }
  0x8c   : > { %v280_v19 = vmul.f32 %v279_v15, %v278_v17 }
  0x8e   : > { %v283_v20 = vadd.f32 %v281_v18, %v280_v19 }
  0x90   : > { %284 = vst [vmem:[%s1020_s30] sm:$0xff] %v283_v20 }
  0x91   : > { %687 = shalt.err (!%p684_p0)
}
  0x92   : > { %s688_s19 = scalar_lea.hbm %s302_s0, 128  ;;  %s692_s18 = scalar_lea.hbm %s1139_s26, 256 }
  0x93   : > { %p689_p1 = scmp.ne.s32.totalorder %s302_s0, %s688_s19  ;;  %p693_p10 = scmp.lt.s32.totalorder %s302_s0, %s1139_s26 }
  0x94   : > { %p694_p7 = scmp.lt.s32.totalorder %s692_s18, %s688_s19 }
  0x95   : > { %p690_p3 = pnand %p689_p1, %p974_p12 }
  0x96   : > { %p695_p2 = por %p694_p7, %p693_p10 }
  0x97   : > { %p691_p4 = pneg %p690_p3 }
  0x99   : > { %p696_p11 = pnand %p695_p2, %p691_p4 }
  0x9b   : > { %699 = shalt.err (!%p696_p11)
}
  0x9c   : > { %481 = dma.vmem_to_hbm [thread:$0]  (%p974_p12), %s305_s23, 128, %s302_s0, %s286_s25  }
  0x9d PF: > { %p500_p13 = scmp.ge.s32.totalorder %s802_s22, 2  ;;  %s329_s29 = sand.u32 1, %s762_s12  }
  0x9e   : > { %p1140_p6 = scmp.ne.s32.totalorder %s1136_s4, 0  ;;  %s330_s2 = scalar_lea.sflag [#allocation5], %s329_s29 }
  0xa0   : > { %p493_p9 = pnand %p500_p13, %p1140_p6 }
  0xa2   : > { %p494_p5 = pneg %p493_p9 }
  0xa4   : > { %753 = dma.done.wait (%p494_p5), %s330_s2, 128  }
  0xa5   : > { %755 = vsyncadd (%p494_p5), %s330_s2, 4294967168  ;;  %s339_s27 = scalar_lea.sflag [#allocation10], %s329_s29 }
  0xa6   : > { %757 = dma.done.wait (%p494_p5), %s339_s27, 128  }
  0xa7   : > { %759 = vsyncadd (%p494_p5), %s339_s27, 4294967168  ;;  %s26_s22 = sadd.s32 1, %s802_s22   ;;  %s1141_s19 = sld [smem:[#allocation15_spill]] }
  0xa8   : > { %p23_p8 = scmp.ge.s32.totalorder %s26_s22, 6   ;;  %s1142_s11 = sld [smem:[#allocation16_spill]] }
  0xa9   : > { %s1143_s21 = sld [smem:[#allocation17_spill]]  ;;  %s1144_s12 = smov %s766_s13 }
  0xaa   : > { %s1145_s13 = smov %s770_s14  ;;  %s1146_s14 = smov %s958_s6 }
  0xab   : > { %s1147_s15 = smov %s778_s16  ;;  %s1148_s16 = smov %s782_s17 }
  0xac   : > { %s1149_s17 = smov %s924_s8  ;;  %s1150_s18 = smov %s794_s20 }
  0xad   :  { %25 = sbr.rel (!%p23_p8) target bundleno = 16 (0x10), region = 107 }
  0xae   : > { %s1151_s20 = smov %s1142_s11 }
  0xb2   :  { %344 = vsyncpa [#allocation4], 1 }
  0xb3   :  { %346 = vsyncpa [#allocation4 + $0x1], 1 }
  0xb4   :  { %347 = vsyncpa [#allocation7], 1 }
  0xb5   :  { %349 = vsyncpa [#allocation7 + $0x1], 1 }
  0xb6   :  { %350 = vsyncpa [#allocation5], 1 }
  0xb7   :  { %352 = vsyncpa [#allocation5 + $0x1], 1 }
  0xb8   :  { %353 = vsyncpa [#allocation10], 1 }
  0xb9   :  { %355 = vsyncpa [#allocation10 + $0x1], 1 }

</bundles_post_ra>
